<compile_context>
chip_gen: v7x
topology: tpu7x:2x2x1
jax: 0.10.0
libtpu: 0.0.40
codegen_flags: <defaults>
</compile_context>

<pallas_src>
import math

import jax
import jax.numpy as jnp
from jax.experimental import pallas as pl
from jax.experimental.pallas import tpu as pltpu


# -----------------------------------------------------------------------------
# Init-time sinusoidal table (mirrors the PyTorch buffer; not part of forward).
# -----------------------------------------------------------------------------
def make_positional_encoding(max_len, d_model):
    assert d_model % 2 == 0, "sinusoidal table requires an even d_model"
    position = jnp.arange(max_len, dtype=jnp.float32)[:, None]          # (max_len, 1)
    div_term = jnp.exp(jnp.arange(0, d_model, 2, dtype=jnp.float32)
                       * (-math.log(10000.0) / d_model))                # (d_model//2,)
    angles = position * div_term                                        # (max_len, D//2)
    pe = jnp.zeros((max_len, d_model), jnp.float32)
    pe = pe.at[:, 0::2].set(jnp.sin(angles))
    pe = pe.at[:, 1::2].set(jnp.cos(angles))
    return pe


# -----------------------------------------------------------------------------
# Kernels
# -----------------------------------------------------------------------------
def _scale_kernel(alpha_ref, pe_ref, o_ref):
    # alpha: (1,) f32 in SMEM; pe_ref / o_ref: identical 2-D VMEM tiles.
    o_ref[...] = alpha_ref[0] * pe_ref[...]


def _scale_add_kernel(alpha_ref, pe_ref, x_ref, o_ref):
    # Fused consumer: y = x + alpha * pe   (pe tile broadcasts over batch).
    o_ref[...] = x_ref[...] + alpha_ref[0] * pe_ref[...]


# -----------------------------------------------------------------------------
# Tiling helpers
# -----------------------------------------------------------------------------
_DEFAULT_VMEM_BUDGET = 8 * 1024 * 1024    # tile-buffer budget; fits every gen's
                                          # default scoped VMEM (16/32/32 MiB)


def _cdiv(a, b):
    return -(-a // b)


def _round8(n):
    return _cdiv(n, 8) * 8


def _pick_row_tile(out_rows, bytes_per_row, budget_bytes):
    """Largest multiple-of-8 row tile within the VMEM budget; keep >= 2 grid
    steps when the problem allows so both v7x TensorCores get work."""
    tr = max(8, (budget_bytes // max(bytes_per_row, 1)) // 8 * 8)
    tr = min(tr, _round8(out_rows))
    if out_rows > 8:
        tr = min(tr, _round8(_cdiv(out_rows, 2)))
    return tr


# -----------------------------------------------------------------------------
# Forward
# -----------------------------------------------------------------------------
def _fused_forward(x, pe, alpha, L, D, vmem_budget_bytes):
    """y = x + alpha * pe[None, :L, :]  in a single HBM pass (opt-in)."""
    B = x.shape[0]
    x = x.astype(jnp.float32)
    bytes_per_row = 2 * (2 * B + 1) * D * 4          # (pe + x + out) double-buffered
    tl = _pick_row_tile(L, bytes_per_row, vmem_budget_bytes)
    grid = (_cdiv(L, tl),)
    tile_bytes = 2 * (2 * B + 1) * tl * D * 4

    return pl.pallas_call(
        _scale_add_kernel,
        out_shape=jax.ShapeDtypeStruct((B, L, D), jnp.float32),
        grid=grid,
        in_specs=[
            pl.BlockSpec(memory_space=pltpu.MemorySpace.SMEM),     # alpha scalar
            pl.BlockSpec((tl, D), lambda i: (i, 0)),               # pe rows
            pl.BlockSpec((B, tl, D), lambda i: (0, i, 0)),         # x tile
        ],
        out_specs=pl.BlockSpec((B, tl, D), lambda i: (0, i, 0)),
        compiler_params=pltpu.CompilerParams(
            dimension_semantics=("parallel",),
            vmem_limit_bytes=int(max(tile_bytes + (2 << 20), 16 << 20))),
        cost_estimate=pl.CostEstimate(
            flops=(B + 1) * L * D,
            transcendentals=0,
            bytes_accessed=4 * (L * D + 2 * B * L * D) + 4),
    )(alpha, pe, x)


def scaled_positional_embedding(x, pe, alpha, *,
                                fuse_add=False,
                                vmem_budget_bytes=_DEFAULT_VMEM_BUDGET):
    """
    Default (fuse_add=False):  forward(x) = alpha * pe[None, :L, :]   (module spec)
    fuse_add=True:             x + alpha * pe[None, :L, :]  -- the usual consumer,
                               fused so the (1, L, D) intermediate never hits HBM.
    Only x.shape[1] is used in the default path (as in the PyTorch module).
    """
    L = x.shape[1]
    max_len, D = pe.shape
    assert L <= max_len, "sequence longer than positional table"
    alpha = jnp.asarray(alpha, jnp.float32).reshape((1,))

    if fuse_add:
        return _fused_forward(x, pe, alpha, L, D, vmem_budget_bytes)

    # ---- module forward: alpha * pe[:L] --------------------------------------
    # Layout choice for lane-dense (unmasked) stores:
    #   * D % 128 == 0                      -> tile (tr, D) rows of pe directly.
    #   * otherwise, if both L*D and max_len*D are multiples of 128, work on a
    #     free row-major (rows, 128) reshape of pe (its first L*D elements are
    #     exactly pe[:L] flattened, so no slice copy is needed).
    #   * else fall back to (tr, D) tiles: still correct, but the output DMA
    #     uses lane-masked partial stores (documented slow path).
    if D % 128 == 0 or (L * D) % 128 != 0 or (max_len * D) % 128 != 0:
        pe2d = pe                                    # (max_len, D)
        out_rows, C = L, D
    else:
        C = 128
        pe2d = pe.reshape(max_len * D // C, C)       # free row-major reshape
        out_rows = L * D // C

    bytes_per_row = 2 * 2 * C * 4                    # (in + out) * double-buffer * f32
    tr = _pick_row_tile(out_rows, bytes_per_row, vmem_budget_bytes)
    grid = (_cdiv(out_rows, tr),)
    tile_bytes = 2 * 2 * tr * C * 4

    out = pl.pallas_call(
        _scale_kernel,
        out_shape=jax.ShapeDtypeStruct((out_rows, C), jnp.float32),
        grid=grid,
        in_specs=[
            pl.BlockSpec(memory_space=pltpu.MemorySpace.SMEM),   # alpha scalar
            pl.BlockSpec((tr, C), lambda i: (i, 0)),             # pe tile
        ],
        out_specs=pl.BlockSpec((tr, C), lambda i: (i, 0)),
        compiler_params=pltpu.CompilerParams(
            dimension_semantics=("parallel",),
            vmem_limit_bytes=int(max(tile_bytes + (2 << 20), 16 << 20))),
        cost_estimate=pl.CostEstimate(
            flops=out_rows * C,                       # one multiply per element
            transcendentals=0,
            bytes_accessed=2 * 4 * out_rows * C + 4), # read pe + write out + alpha
    )(alpha, pe2d)
    return out.reshape(1, L, D)


def reference(x, pe, alpha):
    """Pure-JAX reference reproducing the PyTorch forward."""
    L = x.shape[1]
    return alpha[0] * pe[None, :L, :]


if __name__ == "__main__":
    # Small shapes consistent with the module: batch=2, seq=64, d_model=32.
    B, L, D = 2, 64, 32
    MAX_LEN = 128

    key = jax.random.PRNGKey(0)
    k_x, k_a = jax.random.split(key)

    x = jax.random.normal(k_x, (B, L, D), dtype=jnp.float32)   # only x.shape[1] is used
    alpha = (1.0 + 0.25 * jax.random.normal(k_a, (1,))).astype(jnp.float32)
    pe = make_positional_encoding(MAX_LEN, D)

    # 1) Module forward: lane-dense flattened (rows, 128) path, grid=(2,).
    out = jax.block_until_ready(scaled_positional_embedding(x, pe, alpha))
    ref = reference(x, pe, alpha)
    assert out.shape == (1, L, D)
    assert jnp.allclose(out, ref, atol=1e-6, rtol=1e-6), (
        float(jnp.max(jnp.abs(out - ref))))

    # 2) Awkward L (not a multiple of 8): exercises the cdiv grid + masked tail.
    L2 = 50
    x2 = x[:, :L2]
    out2 = jax.block_until_ready(scaled_positional_embedding(x2, pe, alpha))
    ref2 = reference(x2, pe, alpha)
    assert out2.shape == (1, L2, D)
    assert jnp.allclose(out2, ref2, atol=1e-6, rtol=1e-6), (
        float(jnp.max(jnp.abs(out2 - ref2))))

    # 3) Opt-in fused consumer (x + alpha*pe) -- removes the intermediate's
    #    HBM round trip; semantics of the module's forward are unchanged when
    #    fuse_add=False (the default).
    out3 = jax.block_until_ready(
        scaled_positional_embedding(x, pe, alpha, fuse_add=True))
    ref3 = x + reference(x, pe, alpha)
    assert out3.shape == (B, L, D)
    assert jnp.allclose(out3, ref3, atol=1e-6, rtol=1e-6), (
        float(jnp.max(jnp.abs(out3 - ref3))))

    print("KERNEL_OK")
</pallas_src>

<mosaic_0001>
module attributes {stable_mosaic.version = 11 : i64} {
  func.func @_scale_kernel(%arg0: i32, %arg1: memref<1xf32, #tpu.memory_space<smem>>, %arg2: memref<8x128xf32, #tpu.memory_space<vmem>>, %arg3: memref<8x128xf32, #tpu.memory_space<vmem>>) attributes {dimension_semantics = [#tpu.dimension_semantics<parallel>], iteration_bounds = array<i64: 2>, scalar_prefetch = 0 : i64, scratch_operands = 0 : i64, tpu.core_type = #tpu.core_type<tc>, window_params = [{transform_indices = @transform_0, window_bounds = array<i64: 1>}, {transform_indices = @transform_1, window_bounds = array<i64: 8, 128>}, {transform_indices = @transform_2, window_bounds = array<i64: 8, 128>}]} {
    %c0 = arith.constant 0 : index
    %0 = memref.load %arg1[%c0] : memref<1xf32, #tpu.memory_space<smem>>
    %c0_0 = arith.constant 0 : index
    %c0_1 = arith.constant 0 : index
    %1 = vector.load %arg2[%c0_0, %c0_1] : memref<8x128xf32, #tpu.memory_space<vmem>>, vector<8x128xf32>
    %2 = vector.broadcast %0 : f32 to vector<8x128xf32>
    %3 = arith.mulf %2, %1 : vector<8x128xf32>
    %c0_2 = arith.constant 0 : index
    %c0_3 = arith.constant 0 : index
    %4 = vector.load %arg3[%c0_2, %c0_3] : memref<8x128xf32, #tpu.memory_space<vmem>>, vector<8x128xf32>
    tpu.vector_store %arg3[%c0_2, %c0_3], %3 {strides = array<i32>} : memref<8x128xf32, #tpu.memory_space<vmem>>, vector<8x128xf32>,
    return
  }
  func.func @transform_0(%arg0: i32) -> i32 {
    %c0_i32 = arith.constant 0 : i32
    %c0_i32_0 = arith.constant 0 : i32
    return %c0_i32 : i32
  }
  func.func @transform_1(%arg0: i32) -> (i32, i32) {
    %c0_i32 = arith.constant 0 : i32
    %c0_i32_0 = arith.constant 0 : i32
    return %arg0, %c0_i32 : i32, i32
  }
  func.func @transform_2(%arg0: i32) -> (i32, i32) {
    %c0_i32 = arith.constant 0 : i32
    %c0_i32_0 = arith.constant 0 : i32
    return %arg0, %c0_i32 : i32, i32
  }
}

</mosaic_0001>

<bundles_post_ra>
// kernel: tpu_custom_call.1
= control target key start
LH: loop header
LB: loop body
LE: loop exit
PB: predicated region body
PF: predicated region fallthrough
CT: control target
= control target key end

     0   :  { %s586_s0 = inlined_call_operand.<no memory space> [shape: f32[1], index: 0, kind: input, shape index: {}]   ;;  %s587_s1 = inlined_call_operand.hbm [shape: f32[32,128], index: 1, kind: input, shape index: {}]   ;;  %s588_s2 = inlined_call_operand.hbm [shape: f32[16,128], index: 2, kind: output, shape index: {}]  }
   0x1   :  { %7 = sst [smem:[#allocation2]] %s586_s0 }
   0x2   :  { %8 = vsyncpa [#allocation4], 0 }
   0x3   :  { %10 = vsyncpa [#allocation4 + $0x1], 0 }
   0x4   :  { %11 = vsyncpa [#allocation5], 0 }
   0x5   :  { %13 = vsyncpa [#allocation5 + $0x1], 0  ;;  %s425_s11 = smov 0   ;;  %s427_s12 = smov 0  }
   0x6   :  { %s429_s13 = smov 0   ;;  %s431_s14 = smov 0  }
   0x7 LB: > { %s446_s0 = sadd.s32 4294967295, %s403_s14   ;;  %s249_s15 = sadd.s32 4294967294, %s403_s14   ;;  %s403_s14 = sphi %s431_s14, %s603_s14   ;;  %s399_s13 = sphi %s429_s13, %s602_s13   ;;  %s395_s12 = sphi %s427_s12, %s601_s12   ;;  %s391_s11 = sphi %s425_s11, %s600_s11  }
   0x8   : > { %s450_s16 = sadd.s32 1, %s403_s14   ;;  %s47_s17 = sadd.s32 1, %s399_s13 }
   0x9   : > { %s44_s18 = ssub.s32 %s403_s14, %s450_s16  ;;  %p54_p0 = scmp.ne.s32.totalorder %s399_s13, %s395_s12 }
   0xa   : > { %p45_p1 = scmp.eq.s32.totalorder %s44_s18, 0  ;;  %p55_p2 = scmp.eq.s32.totalorder %s403_s14, 0 }
   0xb   : > { %p60_p3 = scmp.ne.s32.totalorder %s395_s12, %s391_s11  ;;  %p61_p4 = scmp.eq.s32.totalorder %s446_s0, 0 }
   0xc   : > { %s462_s19 = scalar_select %p45_p1, %s399_s13, %s47_s17  }
   0xd   : > { %p464_p5 = por %p55_p2, %p54_p0  ;;  %p468_p6 = por %p61_p4, %p60_p3 }
   0xe   : > { %p84_p7 = scmp.eq.s32.totalorder %s446_s0, 1  ;;  %p90_p8 = scmp.eq.s32.totalorder %s249_s15, 1 }
   0xf   : > { %p273_p10 = scmp.lt.s32.totalorder %s403_s14, 2  ;;  %s113_s24 = sand.u32 1, %s399_s13  }
  0x10   : > { %p475_p11 = por %p84_p7, %p54_p0  ;;  %p479_p12 = por %p90_p8, %p60_p3 }
  0x11   : > { %s253_s25 = sshll.u32 %s403_s14, 7  ;;  %s252_s26 = sshll.u32 %s113_s24, 3 }
  0x12   : > { %s592_s22 = scalar_select %p475_p11, 1, 0 }
  0x13   : > { %s593_s23 = scalar_select %p479_p12, 1, 0 }
  0x14   : > { %s488_s29 = scalar_lea.hbm %s587_s1, %s253_s25  ;;  %s117_s30 = scalar_lea.vmem [#allocation3], %s252_s26 }
  0x15   : > { %s124_s3 = sshll.u32 %s117_s30, 4  ;;  %p492_p13 = pnand %p273_p10, %p464_p5  ;;  %s496_s3 = int_to_ptr.vmem [resolvable:$true] %s124_s3 }
  0x16   : > { %s114_s5 = scalar_lea.sflag [#allocation4], %s113_s24  ;;  %s307_s6 = scalar_lea.hbm %s488_s29, 128 }
  0x17   : > { %p308_p2 = scmp.ne.s32.totalorder %s488_s29, %s307_s6  ;;  %p309_p3 = pneg %p492_p13 }
  0x18   : > { %s312_s9 = scalar_lea.hbm %s587_s1, 512  ;;  %p313_p5 = scmp.lt.u32.totalorder %s488_s29, %s587_s1 }
  0x19   : > { %p310_p4 = pnand %p309_p3, %p308_p2  ;;  %p314_p8 = scmp.lt.u32.totalorder %s312_s9, %s307_s6 }
  0x1a   : > { %p316_p9 = scmp.lt.u32.totalorder %s307_s6, %s488_s29 }
  0x1b   : > { %p311_p7 = pneg %p310_p4  ;;  %p315_p10 = por %p314_p8, %p313_p5 }
  0x1d   : > { %p317_p0 = por %p316_p9, %p315_p10 }
  0x1f   : > { %p318_p1 = pnand %p317_p0, %p311_p7 }
  0x21   : > { %321 = shalt.err (!%p318_p1)
}
  0x22   : > { %s322_s17 = scalar_lea.vmem %s496_s3, 128  ;;  %s405_s18 = smov [#allocation3]  }
  0x23   : > { %p323_p2 = scmp.ne.s32.totalorder %s496_s3, %s322_s17  ;;  %s327_s20 = sshll.u32 %s405_s18, 4  ;;  %s328_s20 = int_to_ptr.vmem [resolvable:$false] %s327_s20 }
  0x24   : > { %s329_s24 = scalar_lea.vmem %s328_s20, 256  ;;  %p330_p11 = scmp.lt.s32.totalorder %s496_s3, %s328_s20 }
  0x25   : > { %p325_p4 = pnand %p323_p2, %p309_p3  ;;  %p331_p5 = scmp.lt.s32.totalorder %s329_s24, %s322_s17 }
  0x27   : > { %p326_p12 = pneg %p325_p4  ;;  %p332_p8 = por %p331_p5, %p330_p11 }
  0x29   : > { %p333_p9 = pnand %p332_p8, %p326_p12 }
  0x2b   : > { %336 = shalt.err (!%p333_p9)
}
  0x2c   : > { %268 = dma.hbm_to_vmem [thread:$0]  (!%p492_p13), %s488_s29, 128, %s496_s3, %s114_s5  }
  0x2d   : > { %p595_p0 = scmp.lt.s32.totalorder %s403_s14, 3  ;;  %p596_p1 = scmp.ge.s32.totalorder %s403_s14, 1 }
  0x2f   : > { %p130_p3 = pnand %p596_p1, %p595_p0 }
  0x30   : > { %s530_s25 = sand.u32 (!%p130_p3), 1, %s395_s12  }
  0x31   : > { %133 = sbr.rel (%p130_p3) target bundleno = 83 (0x53), region = 28  ;;  %s255_s26 = sshll.u32 (!%p130_p3), %s530_s25, 3 }
  0x32   : > { %s136_s27 = scalar_lea.sflag (!%p130_p3), [#allocation4], %s530_s25  ;;  %s139_s28 = scalar_lea.vmem (!%p130_p3), [#allocation3], %s255_s26 }
  0x38   : > { %382 = dma.done.wait (%p468_p6), %s136_s27, 128  }
  0x39   : > { %384 = vsyncadd (%p468_p6), %s136_s27, 4294967168  ;;  %s160_s29 = sld [smem:[#allocation2]]  ;;  %s159_s30 = scalar_lea.vmem [#allocation6], %s255_s26  ;;  %v161_v0 = vld [vmem:[%s139_s28] sm:$0xff] }
  0x3a   : > { %s179_s3 = sshll.u32 %s159_s30, 4  ;;  %s258_s4 = sshll.u32 %s446_s0, 7  ;;  %s539_s3 = int_to_ptr.vmem [resolvable:$true] %s179_s3 }
  0x3b   : > { %s544_s21 = scalar_lea.hbm %s588_s2, %s258_s4  ;;  %s166_s7 = scalar_lea.sflag [#allocation5], %s530_s25 }
  0x3c   : > { %s337_s8 = scalar_lea.vmem %s539_s3, 128  ;;  %p597_p11 = scmp.ne.s32.totalorder %s592_s22, 0 }
  0x3d   : > { %p338_p6 = scmp.ne.s32.totalorder %s539_s3, %s337_s8  ;;  %s406_s0 = smov [#allocation6]  }
  0x3e   : > { %s341_s9 = sshll.u32 %s406_s0, 4  ;;  %s342_s9 = int_to_ptr.vmem [resolvable:$false] %s341_s9 }
  0x3f   : > { %v162_v1 = vstv %s160_s29  ;;  %p339_p12 = pnand %p338_p6, %p597_p11  ;;  %s343_s10 = scalar_lea.vmem %s342_s9, 256 }
  0x40   : > { %v163_v2 = vmul.f32 %v162_v1, %v161_v0  ;;  %p344_p7 = scmp.lt.s32.totalorder %s539_s3, %s342_s9  ;;  %p345_p10 = scmp.lt.s32.totalorder %s343_s10, %s337_s8 }
  0x41   : > { %p340_p13 = pneg %p339_p12 }
  0x42   : > { %164 = vst [vmem:[%s159_s30] sm:$0xff] %v163_v2  ;;  %p346_p2 = por %p345_p10, %p344_p7 }
  0x44   : > { %p347_p4 = pnand %p346_p2, %p340_p13 }
  0x46   : > { %350 = shalt.err (!%p347_p4)
}
  0x47   : > { %s351_s15 = scalar_lea.hbm %s544_s21, 128  ;;  %s355_s20 = scalar_lea.hbm %s588_s2, 256 }
  0x48   : > { %p352_p5 = scmp.ne.s32.totalorder %s544_s21, %s351_s15  ;;  %p356_p0 = scmp.lt.u32.totalorder %s544_s21, %s588_s2 }
  0x49   : > { %p357_p1 = scmp.lt.u32.totalorder %s355_s20, %s351_s15  ;;  %p359_p6 = scmp.lt.u32.totalorder %s351_s15, %s544_s21 }
  0x4a   : > { %p353_p8 = pnand %p352_p5, %p597_p11 }
  0x4b   : > { %p358_p3 = por %p357_p1, %p356_p0 }
  0x4c   : > { %p354_p9 = pneg %p353_p8 }
  0x4d   : > { %p360_p12 = por %p359_p6, %p358_p3 }
  0x4f   : > { %p361_p13 = pnand %p360_p12, %p354_p9 }
  0x51   : > { %364 = shalt.err (!%p361_p13)
}
  0x52   : > { %263 = dma.vmem_to_hbm [thread:$0]  (%p597_p11), %s539_s3, 128, %s544_s21, %s166_s7  }
  0x53 PF: > { %s191_s26 = sand.u32 1, %s391_s11   ;;  %p598_p7 = scmp.ne.s32.totalorder %s593_s23, 0 }
  0x54   : > { %p599_p10 = scmp.ge.s32.totalorder %s403_s14, 2  ;;  %s192_s27 = scalar_lea.sflag [#allocation5], %s191_s26 }
  0x56   : > { %p270_p2 = pnand %p599_p10, %p598_p7 }
  0x58   : > { %386 = dma.done.wait (!%p270_p2), %s192_s27, 128  }
  0x59   : > { %388 = vsyncadd (!%p270_p2), %s192_s27, 4294967168  ;;  %p16_p4 = scmp.ge.s32.totalorder %s450_s16, 4   ;;  %s600_s11 = smov %s395_s12 }
  0x5a   : > { %s601_s12 = smov %s399_s13  ;;  %s602_s13 = smov %s462_s19 }
  0x5b   : > { %s603_s14 = smov %s450_s16  ;;  %18 = sbr.rel (!%p16_p4) target bundleno = 7 (0x7), region = 73 }
  0x62   :  { %197 = vsyncpa [#allocation4], 1 }
  0x63   :  { %199 = vsyncpa [#allocation4 + $0x1], 1 }
  0x64   :  { %200 = vsyncpa [#allocation5], 1 }
  0x65   :  { %202 = vsyncpa [#allocation5 + $0x1], 1 }

</bundles_post_ra>
